<compile_context>
chip_gen: v5e
topology: v5e:2x2
jax: 0.10.0
libtpu: 0.0.40
codegen_flags: <defaults>
</compile_context>

<pallas_src>
import math
import functools

import jax
import jax.numpy as jnp
from jax.experimental import pallas as pl
from jax.experimental.pallas import tpu as pltpu


def _mhsa_kernel(x_ref, wqkv_ref, bqkv_ref, wo_ref, bo_ref, o_ref, *,
                 num_heads: int, dk: int, dv: int, mm_dtype):
    """One block of `block_batch` batch elements per grid step."""
    bb, n, d = x_ref.shape
    r = bb * n
    e_k = dk // num_heads
    e_v = dv // num_heads

    x2 = x_ref[...].reshape(r, d).astype(mm_dtype)

    # Fused Q|K|V projection: a single MXU pass with a (2*Dk + Dv)-wide output.
    qkv = jnp.dot(x2, wqkv_ref[...].astype(mm_dtype),
                  preferred_element_type=jnp.float32) + bqkv_ref[...]

    wo = wo_ref[...].astype(mm_dtype)                         # (Dv, D), scale folded in

    acc = jnp.zeros((r, d), jnp.float32)
    for h in range(num_heads):                                # static unroll, H is small
        # Head slices are static lane slices of the fused projection result.
        q_h = qkv[:, h * e_k:(h + 1) * e_k].reshape(bb, n, e_k).astype(mm_dtype)
        k_h = qkv[:, dk + h * e_k:dk + (h + 1) * e_k].reshape(bb, n, e_k).astype(mm_dtype)
        v_h = qkv[:, 2 * dk + h * e_v:2 * dk + (h + 1) * e_v].reshape(bb, n, e_v).astype(mm_dtype)

        # Per-(batch, head) scores; contraction depth is only e_k, inherently
        # MXU-sparse -- the win here is avoiding relayouts, not tiling.
        s = jnp.einsum('bqd,bkd->bqk', q_h, k_h,
                       preferred_element_type=jnp.float32)    # (bb, n, n)

        # Softmax in fp32. The reference's post-softmax 1/sqrt(Dk) scale is folded
        # into wo at pack time; the divide uses the EUP reciprocal (own VLIW slot).
        m = jnp.max(s, axis=-1, keepdims=True)
        p = jnp.exp(s - m)
        denom = jnp.sum(p, axis=-1, keepdims=True)
        attn = p * pl.reciprocal(denom, approx=True)
        # TODO(synk): attention dropout (train mode) not implemented; inference identity.

        ctx_h = jnp.einsum('bqk,bkd->bqd', attn.astype(mm_dtype), v_h,
                           preferred_element_type=jnp.float32)  # (bb, n, e_v)

        # Per-head partial output projection: avoids a lane-dim concat relayout;
        # head-major wo rows line up with the 'b h n e -> b n (h e)' concat.
        acc += jnp.dot(ctx_h.reshape(r, e_v).astype(mm_dtype),
                       wo[h * e_v:(h + 1) * e_v, :],
                       preferred_element_type=jnp.float32)

    out = acc + bo_ref[...]
    o_ref[...] = out.reshape(bb, n, d).astype(o_ref.dtype)


def _pick_block_batch(B: int, N: int, rows_target: int = 128) -> int:
    """Batch enough rows per grid step for MXU/lane density, but keep >= 2 grid
    steps when possible so v7x's two TensorCores both get work."""
    want = max(1, -(-rows_target // N))          # ceil(rows_target / N)
    cap = max(1, B // 2) if B >= 2 else B
    bb = min(want, cap)
    while B % bb:
        bb -= 1
    return bb


def mhsa_einops_pallas(x, params, *, num_heads: int, proj_dim_keys: int,
                       block_batch=None, matmul_dtype=jnp.float32):
    """x: (B, N, D) float32. params: dict of pre-packed weights (see pack_params)."""
    B, N, D = x.shape
    wqkv, bqkv = params["wqkv"], params["bqkv"]   # (D, 2*Dk+Dv), (1, 2*Dk+Dv)
    wo, bo = params["wo"], params["bo"]           # (Dv, D) [scale folded], (1, D)
    Dqkv = wqkv.shape[1]
    Dv = wo.shape[0]

    if block_batch is None:
        block_batch = _pick_block_batch(B, N)
    assert B % block_batch == 0

    kernel = functools.partial(_mhsa_kernel, num_heads=num_heads,
                               dk=proj_dim_keys, dv=Dv, mm_dtype=matmul_dtype)

    full = lambda shape: pl.BlockSpec(shape, lambda b: tuple(0 for _ in shape))
    return pl.pallas_call(
        kernel,
        out_shape=jax.ShapeDtypeStruct((B, N, D), x.dtype),
        grid_spec=pltpu.PrefetchScalarGridSpec(
            num_scalar_prefetch=0,
            grid=(B // block_batch,),
            in_specs=[
                pl.BlockSpec((block_batch, N, D), lambda b: (b, 0, 0)),  # x
                full((D, Dqkv)), full((1, Dqkv)),                        # wqkv, bqkv
                full((Dv, D)), full((1, D)),                             # wo, bo
            ],
            out_specs=pl.BlockSpec((block_batch, N, D), lambda b: (b, 0, 0)),
        ),
        compiler_params=pltpu.CompilerParams(
            dimension_semantics=("parallel",)),
    )(x, wqkv, bqkv, wo, bo)


def pack_params(key, patch_embedding_dim, proj_dim_keys, proj_dim_values, num_heads):
    """Deterministic init mirroring the nn.Linear shapes, then pre-permute for the
    'b n (h e qk)' interleaved q/k factoring, fuse Q|K|V, and fold the post-softmax
    1/sqrt(Dk) scale into Wo."""
    D, Dk, Dv, H = patch_embedding_dim, proj_dim_keys, proj_dim_values, num_heads
    e_k = Dk // H
    ks = jax.random.split(key, 6)

    def linear_init(k, out_f, in_f):
        bound = 1.0 / math.sqrt(in_f)
        kw, kb = jax.random.split(k)
        w = jax.random.uniform(kw, (out_f, in_f), jnp.float32, -bound, bound)
        b = jax.random.uniform(kb, (out_f,), jnp.float32, -bound, bound)
        return w, b

    w_qk, b_qk = linear_init(ks[0], 2 * Dk, D)   # nn.Linear(D, 2*Dk)
    w_v,  b_v  = linear_init(ks[1], Dv, D)       # nn.Linear(D, Dv)
    w_o,  b_o  = linear_init(ks[2], D, Dv)       # nn.Linear(Dv, D)

    # Rearrange 'b n (h e qk)': output index j = head*(e_k*2) + e*2 + qk_idx.
    w_qk_r = w_qk.reshape(H, e_k, 2, D)          # (h, e, qk, D)
    b_qk_r = b_qk.reshape(H, e_k, 2)
    wq = jnp.transpose(w_qk_r[:, :, 0, :].reshape(Dk, D))   # (D, Dk), head-major cols
    wk = jnp.transpose(w_qk_r[:, :, 1, :].reshape(Dk, D))
    bq = b_qk_r[:, :, 0].reshape(Dk)
    bk = b_qk_r[:, :, 1].reshape(Dk)

    # 'b n (h e 1)' is already head-major: no permutation needed.
    wv = jnp.transpose(w_v)                      # (D, Dv)

    # Fused Q|K|V projection weights/bias.
    wqkv = jnp.concatenate([wq, wk, wv], axis=1)             # (D, 2*Dk + Dv)
    bqkv = jnp.concatenate([bq, bk, b_v]).reshape(1, 2 * Dk + Dv)

    # Fold the reference's post-softmax 1/sqrt(Dk) scale into the output projection.
    wo = jnp.transpose(w_o) * (1.0 / math.sqrt(float(Dk)))   # (Dv, D)
    bo = b_o.reshape(1, D)

    raw = dict(w_qk=w_qk, b_qk=b_qk, w_v=w_v, b_v=b_v, w_o=w_o, b_o=b_o)
    packed = dict(wqkv=wqkv, bqkv=bqkv, wo=wo, bo=bo)
    return packed, raw


def reference_forward(x, raw, *, num_heads, proj_dim_keys):
    """Pure-JAX transcription of the PyTorch forward for verification."""
    B, N, D = x.shape
    Dk = raw["w_qk"].shape[0] // 2
    Dv = raw["w_v"].shape[0]
    H = num_heads
    e_k, e_v = Dk // H, Dv // H

    qk = x @ raw["w_qk"].T + raw["b_qk"]                 # (B, N, 2*Dk)
    v = x @ raw["w_v"].T + raw["b_v"]                    # (B, N, Dv)
    qk_r = qk.reshape(B, N, H, e_k, 2).transpose(4, 0, 2, 1, 3)   # (2, B, H, N, e)
    q, k = qk_r[0], qk_r[1]
    vals = v.reshape(B, N, H, e_v).transpose(0, 2, 1, 3)          # (B, H, N, e_v)
    scores = jnp.einsum('bhqd,bhkd->bhqk', q, k)
    attn = jax.nn.softmax(scores, axis=-1) / math.sqrt(float(proj_dim_keys))
    ctx = jnp.einsum('bhsl,bhlv->bhsv', attn, vals)               # (B, H, N, e_v)
    concat = ctx.transpose(0, 2, 1, 3).reshape(B, N, Dv)
    return concat @ raw["w_o"].T + raw["b_o"]


if __name__ == "__main__":
    # Small shapes consistent with the module (B large enough to exercise row batching).
    B, N = 8, 8
    patch_embedding_dim = 32
    proj_dim_keys = 32
    proj_dim_values = 32
    num_heads = 4
    attn_dropout_prob = 0.0   # inference: dropout is identity

    key = jax.random.PRNGKey(0)
    kx, kp = jax.random.split(key)
    x = jax.random.normal(kx, (B, N, patch_embedding_dim), jnp.float32)
    packed, raw = pack_params(kp, patch_embedding_dim, proj_dim_keys,
                              proj_dim_values, num_heads)

    ref = reference_forward(x, raw, num_heads=num_heads, proj_dim_keys=proj_dim_keys)

    # fp32 MXU inputs (v5e-friendly default path).
    out = mhsa_einops_pallas(x, packed, num_heads=num_heads,
                             proj_dim_keys=proj_dim_keys)
    out = jax.block_until_ready(out)
    assert out.shape == (B, N, patch_embedding_dim)
    assert jnp.allclose(out, ref, atol=5e-3, rtol=5e-3), "fp32 kernel mismatch vs reference"

    # bf16 MXU inputs, fp32 accumulation (v6e/v7x fast path; softmax stays fp32).
    out_bf16 = mhsa_einops_pallas(x, packed, num_heads=num_heads,
                                  proj_dim_keys=proj_dim_keys,
                                  matmul_dtype=jnp.bfloat16)
    out_bf16 = jax.block_until_ready(out_bf16)
    assert jnp.allclose(out_bf16, ref, atol=5e-2, rtol=5e-2), "bf16 kernel mismatch vs reference"

    print("KERNEL_OK")
</pallas_src>

<mosaic_0001>
module attributes {stable_mosaic.version = 11 : i64} {
  func.func @_mhsa_kernel(%arg0: i32, %arg1: memref<4x8x32xf32, #tpu.memory_space<vmem>>, %arg2: memref<32x96xf32, #tpu.memory_space<vmem>>, %arg3: memref<1x96xf32, #tpu.memory_space<vmem>>, %arg4: memref<32x32xf32, #tpu.memory_space<vmem>>, %arg5: memref<1x32xf32, #tpu.memory_space<vmem>>, %arg6: memref<4x8x32xf32, #tpu.memory_space<vmem>>) attributes {dimension_semantics = [#tpu.dimension_semantics<parallel>], iteration_bounds = array<i64: 2>, scalar_prefetch = 0 : i64, scratch_operands = 0 : i64, tpu.core_type = #tpu.core_type<tc>, window_params = [{transform_indices = @transform_0, window_bounds = array<i64: 4, 8, 32>}, {pipeline_mode = #tpu.pipeline_mode<synchronous>, transform_indices = @transform_1, window_bounds = array<i64: 32, 96>}, {pipeline_mode = #tpu.pipeline_mode<synchronous>, transform_indices = @transform_2, window_bounds = array<i64: 1, 96>}, {pipeline_mode = #tpu.pipeline_mode<synchronous>, transform_indices = @transform_3, window_bounds = array<i64: 32, 32>}, {pipeline_mode = #tpu.pipeline_mode<synchronous>, transform_indices = @transform_4, window_bounds = array<i64: 1, 32>}, {transform_indices = @transform_5, window_bounds = array<i64: 4, 8, 32>}]} {
    %c0 = arith.constant 0 : index
    %c0_0 = arith.constant 0 : index
    %c0_1 = arith.constant 0 : index
    %0 = vector.load %arg1[%c0, %c0_0, %c0_1] : memref<4x8x32xf32, #tpu.memory_space<vmem>>, vector<4x8x32xf32>
    %1 = vector.shape_cast %0 : vector<4x8x32xf32> to vector<32x32xf32>
    %c0_2 = arith.constant 0 : index
    %c0_3 = arith.constant 0 : index
    %2 = vector.load %arg2[%c0_2, %c0_3] : memref<32x96xf32, #tpu.memory_space<vmem>>, vector<32x96xf32>
    %cst = arith.constant dense<0.000000e+00> : vector<32x96xf32>
    %3 = tpu.matmul %1, %2, %cst {dimension_numbers = #tpu.dot_dimension_numbers<[1], [0], [0], [1], [0, 0, 1, 1], [], []>} : vector<32x32xf32>, vector<32x96xf32>, vector<32x96xf32> -> vector<32x96xf32>
    %c0_4 = arith.constant 0 : index
    %c0_5 = arith.constant 0 : index
    %4 = vector.load %arg3[%c0_4, %c0_5] : memref<1x96xf32, #tpu.memory_space<vmem>>, vector<1x96xf32>
    %5 = vector.broadcast %4 : vector<1x96xf32> to vector<32x96xf32>
    %6 = arith.addf %3, %5 : vector<32x96xf32>
    %c0_6 = arith.constant 0 : index
    %c0_7 = arith.constant 0 : index
    %7 = vector.load %arg4[%c0_6, %c0_7] : memref<32x32xf32, #tpu.memory_space<vmem>>, vector<32x32xf32>
    %cst_8 = arith.constant 0.000000e+00 : f32
    %8 = vector.broadcast %cst_8 : f32 to vector<32x32xf32>
    %9 = vector.extract_strided_slice %6 {offsets = [0, 0], sizes = [32, 8], strides = [1, 1]} : vector<32x96xf32> to vector<32x8xf32>
    %10 = vector.shape_cast %9 : vector<32x8xf32> to vector<4x8x8xf32>
    %11 = vector.extract_strided_slice %6 {offsets = [0, 32], sizes = [32, 8], strides = [1, 1]} : vector<32x96xf32> to vector<32x8xf32>
    %12 = vector.shape_cast %11 : vector<32x8xf32> to vector<4x8x8xf32>
    %13 = vector.extract_strided_slice %6 {offsets = [0, 64], sizes = [32, 8], strides = [1, 1]} : vector<32x96xf32> to vector<32x8xf32>
    %14 = vector.shape_cast %13 : vector<32x8xf32> to vector<4x8x8xf32>
    "tpu.trace_start"() <{level = 10 : i32, message = "bqd,bkd->bqk"}> : () -> ()
    %cst_9 = arith.constant dense<0.000000e+00> : vector<4x8x8xf32>
    %15 = tpu.matmul %10, %12, %cst_9 {dimension_numbers = #tpu.dot_dimension_numbers<[2], [2], [1], [1], [0, 0, 0, 1, 1, 1], [0], [0]>} : vector<4x8x8xf32>, vector<4x8x8xf32>, vector<4x8x8xf32> -> vector<4x8x8xf32>
    "tpu.trace_stop"() : () -> ()
    %cst_10 = arith.constant dense<0xFF800000> : vector<4x8xf32>
    %16 = vector.multi_reduction <maximumf>, %15, %cst_10 [2] : vector<4x8x8xf32> to vector<4x8xf32>
    %17 = vector.shape_cast %16 : vector<4x8xf32> to vector<4x8x1xf32>
    %18 = vector.broadcast %17 : vector<4x8x1xf32> to vector<4x8x8xf32>
    %19 = arith.subf %15, %18 : vector<4x8x8xf32>
    %20 = math.exp %19 : vector<4x8x8xf32>
    %cst_11 = arith.constant dense<0.000000e+00> : vector<4x8xf32>
    %21 = vector.multi_reduction <add>, %20, %cst_11 [2] : vector<4x8x8xf32> to vector<4x8xf32>
    %22 = vector.shape_cast %21 : vector<4x8xf32> to vector<4x8x1xf32>
    %23 = tpu.reciprocal %22 {approx = true} : vector<4x8x1xf32> -> vector<4x8x1xf32>
    %24 = vector.broadcast %23 : vector<4x8x1xf32> to vector<4x8x8xf32>
    %25 = arith.mulf %20, %24 : vector<4x8x8xf32>
    "tpu.trace_start"() <{level = 10 : i32, message = "bqk,bkd->bqd"}> : () -> ()
    %cst_12 = arith.constant dense<0.000000e+00> : vector<4x8x8xf32>
    %26 = tpu.matmul %25, %14, %cst_12 {dimension_numbers = #tpu.dot_dimension_numbers<[2], [1], [1], [2], [0, 0, 0, 1, 1, 2], [0], [0]>} : vector<4x8x8xf32>, vector<4x8x8xf32>, vector<4x8x8xf32> -> vector<4x8x8xf32>
    "tpu.trace_stop"() : () -> ()
    %27 = vector.shape_cast %26 : vector<4x8x8xf32> to vector<32x8xf32>
    %28 = vector.extract_strided_slice %7 {offsets = [0, 0], sizes = [8, 32], strides = [1, 1]} : vector<32x32xf32> to vector<8x32xf32>
    %cst_13 = arith.constant dense<0.000000e+00> : vector<32x32xf32>
    %29 = tpu.matmul %27, %28, %cst_13 {dimension_numbers = #tpu.dot_dimension_numbers<[1], [0], [0], [1], [0, 0, 1, 1], [], []>} : vector<32x8xf32>, vector<8x32xf32>, vector<32x32xf32> -> vector<32x32xf32>
    %30 = arith.addf %8, %29 : vector<32x32xf32>
    %31 = vector.extract_strided_slice %6 {offsets = [0, 8], sizes = [32, 8], strides = [1, 1]} : vector<32x96xf32> to vector<32x8xf32>
    %32 = vector.shape_cast %31 : vector<32x8xf32> to vector<4x8x8xf32>
    %33 = vector.extract_strided_slice %6 {offsets = [0, 40], sizes = [32, 8], strides = [1, 1]} : vector<32x96xf32> to vector<32x8xf32>
    %34 = vector.shape_cast %33 : vector<32x8xf32> to vector<4x8x8xf32>
    %35 = vector.extract_strided_slice %6 {offsets = [0, 72], sizes = [32, 8], strides = [1, 1]} : vector<32x96xf32> to vector<32x8xf32>
    %36 = vector.shape_cast %35 : vector<32x8xf32> to vector<4x8x8xf32>
    "tpu.trace_start"() <{level = 10 : i32, message = "bqd,bkd->bqk"}> : () -> ()
    %cst_14 = arith.constant dense<0.000000e+00> : vector<4x8x8xf32>
    %37 = tpu.matmul %32, %34, %cst_14 {dimension_numbers = #tpu.dot_dimension_numbers<[2], [2], [1], [1], [0, 0, 0, 1, 1, 1], [0], [0]>} : vector<4x8x8xf32>, vector<4x8x8xf32>, vector<4x8x8xf32> -> vector<4x8x8xf32>
    "tpu.trace_stop"() : () -> ()
    %cst_15 = arith.constant dense<0xFF800000> : vector<4x8xf32>
    %38 = vector.multi_reduction <maximumf>, %37, %cst_15 [2] : vector<4x8x8xf32> to vector<4x8xf32>
    %39 = vector.shape_cast %38 : vector<4x8xf32> to vector<4x8x1xf32>
    %40 = vector.broadcast %39 : vector<4x8x1xf32> to vector<4x8x8xf32>
    %41 = arith.subf %37, %40 : vector<4x8x8xf32>
    %42 = math.exp %41 : vector<4x8x8xf32>
    %cst_16 = arith.constant dense<0.000000e+00> : vector<4x8xf32>
    %43 = vector.multi_reduction <add>, %42, %cst_16 [2] : vector<4x8x8xf32> to vector<4x8xf32>
    %44 = vector.shape_cast %43 : vector<4x8xf32> to vector<4x8x1xf32>
    %45 = tpu.reciprocal %44 {approx = true} : vector<4x8x1xf32> -> vector<4x8x1xf32>
    %46 = vector.broadcast %45 : vector<4x8x1xf32> to vector<4x8x8xf32>
    %47 = arith.mulf %42, %46 : vector<4x8x8xf32>
    "tpu.trace_start"() <{level = 10 : i32, message = "bqk,bkd->bqd"}> : () -> ()
    %cst_17 = arith.constant dense<0.000000e+00> : vector<4x8x8xf32>
    %48 = tpu.matmul %47, %36, %cst_17 {dimension_numbers = #tpu.dot_dimension_numbers<[2], [1], [1], [2], [0, 0, 0, 1, 1, 2], [0], [0]>} : vector<4x8x8xf32>, vector<4x8x8xf32>, vector<4x8x8xf32> -> vector<4x8x8xf32>
    "tpu.trace_stop"() : () -> ()
    %49 = vector.shape_cast %48 : vector<4x8x8xf32> to vector<32x8xf32>
    %50 = vector.extract_strided_slice %7 {offsets = [8, 0], sizes = [8, 32], strides = [1, 1]} : vector<32x32xf32> to vector<8x32xf32>
    %cst_18 = arith.constant dense<0.000000e+00> : vector<32x32xf32>
    %51 = tpu.matmul %49, %50, %cst_18 {dimension_numbers = #tpu.dot_dimension_numbers<[1], [0], [0], [1], [0, 0, 1, 1], [], []>} : vector<32x8xf32>, vector<8x32xf32>, vector<32x32xf32> -> vector<32x32xf32>
    %52 = arith.addf %30, %51 : vector<32x32xf32>
    %53 = vector.extract_strided_slice %6 {offsets = [0, 16], sizes = [32, 8], strides = [1, 1]} : vector<32x96xf32> to vector<32x8xf32>
    %54 = vector.shape_cast %53 : vector<32x8xf32> to vector<4x8x8xf32>
    %55 = vector.extract_strided_slice %6 {offsets = [0, 48], sizes = [32, 8], strides = [1, 1]} : vector<32x96xf32> to vector<32x8xf32>
    %56 = vector.shape_cast %55 : vector<32x8xf32> to vector<4x8x8xf32>
    %57 = vector.extract_strided_slice %6 {offsets = [0, 80], sizes = [32, 8], strides = [1, 1]} : vector<32x96xf32> to vector<32x8xf32>
    %58 = vector.shape_cast %57 : vector<32x8xf32> to vector<4x8x8xf32>
    "tpu.trace_start"() <{level = 10 : i32, message = "bqd,bkd->bqk"}> : () -> ()
    %cst_19 = arith.constant dense<0.000000e+00> : vector<4x8x8xf32>
    %59 = tpu.matmul %54, %56, %cst_19 {dimension_numbers = #tpu.dot_dimension_numbers<[2], [2], [1], [1], [0, 0, 0, 1, 1, 1], [0], [0]>} : vector<4x8x8xf32>, vector<4x8x8xf32>, vector<4x8x8xf32> -> vector<4x8x8xf32>
    "tpu.trace_stop"() : () -> ()
    %cst_20 = arith.constant dense<0xFF800000> : vector<4x8xf32>
    %60 = vector.multi_reduction <maximumf>, %59, %cst_20 [2] : vector<4x8x8xf32> to vector<4x8xf32>
    %61 = vector.shape_cast %60 : vector<4x8xf32> to vector<4x8x1xf32>
    %62 = vector.broadcast %61 : vector<4x8x1xf32> to vector<4x8x8xf32>
    %63 = arith.subf %59, %62 : vector<4x8x8xf32>
    %64 = math.exp %63 : vector<4x8x8xf32>
    %cst_21 = arith.constant dense<0.000000e+00> : vector<4x8xf32>
    %65 = vector.multi_reduction <add>, %64, %cst_21 [2] : vector<4x8x8xf32> to vector<4x8xf32>
    %66 = vector.shape_cast %65 : vector<4x8xf32> to vector<4x8x1xf32>
    %67 = tpu.reciprocal %66 {approx = true} : vector<4x8x1xf32> -> vector<4x8x1xf32>
    %68 = vector.broadcast %67 : vector<4x8x1xf32> to vector<4x8x8xf32>
    %69 = arith.mulf %64, %68 : vector<4x8x8xf32>
    "tpu.trace_start"() <{level = 10 : i32, message = "bqk,bkd->bqd"}> : () -> ()
    %cst_22 = arith.constant dense<0.000000e+00> : vector<4x8x8xf32>
    %70 = tpu.matmul %69, %58, %cst_22 {dimension_numbers = #tpu.dot_dimension_numbers<[2], [1], [1], [2], [0, 0, 0, 1, 1, 2], [0], [0]>} : vector<4x8x8xf32>, vector<4x8x8xf32>, vector<4x8x8xf32> -> vector<4x8x8xf32>
    "tpu.trace_stop"() : () -> ()
    %71 = vector.shape_cast %70 : vector<4x8x8xf32> to vector<32x8xf32>
    %72 = vector.extract_strided_slice %7 {offsets = [16, 0], sizes = [8, 32], strides = [1, 1]} : vector<32x32xf32> to vector<8x32xf32>
    %cst_23 = arith.constant dense<0.000000e+00> : vector<32x32xf32>
    %73 = tpu.matmul %71, %72, %cst_23 {dimension_numbers = #tpu.dot_dimension_numbers<[1], [0], [0], [1], [0, 0, 1, 1], [], []>} : vector<32x8xf32>, vector<8x32xf32>, vector<32x32xf32> -> vector<32x32xf32>
    %74 = arith.addf %52, %73 : vector<32x32xf32>
    %75 = vector.extract_strided_slice %6 {offsets = [0, 24], sizes = [32, 8], strides = [1, 1]} : vector<32x96xf32> to vector<32x8xf32>
    %76 = vector.shape_cast %75 : vector<32x8xf32> to vector<4x8x8xf32>
    %77 = vector.extract_strided_slice %6 {offsets = [0, 56], sizes = [32, 8], strides = [1, 1]} : vector<32x96xf32> to vector<32x8xf32>
    %78 = vector.shape_cast %77 : vector<32x8xf32> to vector<4x8x8xf32>
    %79 = vector.extract_strided_slice %6 {offsets = [0, 88], sizes = [32, 8], strides = [1, 1]} : vector<32x96xf32> to vector<32x8xf32>
    %80 = vector.shape_cast %79 : vector<32x8xf32> to vector<4x8x8xf32>
    "tpu.trace_start"() <{level = 10 : i32, message = "bqd,bkd->bqk"}> : () -> ()
    %cst_24 = arith.constant dense<0.000000e+00> : vector<4x8x8xf32>
    %81 = tpu.matmul %76, %78, %cst_24 {dimension_numbers = #tpu.dot_dimension_numbers<[2], [2], [1], [1], [0, 0, 0, 1, 1, 1], [0], [0]>} : vector<4x8x8xf32>, vector<4x8x8xf32>, vector<4x8x8xf32> -> vector<4x8x8xf32>
    "tpu.trace_stop"() : () -> ()
    %cst_25 = arith.constant dense<0xFF800000> : vector<4x8xf32>
    %82 = vector.multi_reduction <maximumf>, %81, %cst_25 [2] : vector<4x8x8xf32> to vector<4x8xf32>
    %83 = vector.shape_cast %82 : vector<4x8xf32> to vector<4x8x1xf32>
    %84 = vector.broadcast %83 : vector<4x8x1xf32> to vector<4x8x8xf32>
    %85 = arith.subf %81, %84 : vector<4x8x8xf32>
    %86 = math.exp %85 : vector<4x8x8xf32>
    %cst_26 = arith.constant dense<0.000000e+00> : vector<4x8xf32>
    %87 = vector.multi_reduction <add>, %86, %cst_26 [2] : vector<4x8x8xf32> to vector<4x8xf32>
    %88 = vector.shape_cast %87 : vector<4x8xf32> to vector<4x8x1xf32>
    %89 = tpu.reciprocal %88 {approx = true} : vector<4x8x1xf32> -> vector<4x8x1xf32>
    %90 = vector.broadcast %89 : vector<4x8x1xf32> to vector<4x8x8xf32>
    %91 = arith.mulf %86, %90 : vector<4x8x8xf32>
    "tpu.trace_start"() <{level = 10 : i32, message = "bqk,bkd->bqd"}> : () -> ()
    %cst_27 = arith.constant dense<0.000000e+00> : vector<4x8x8xf32>
    %92 = tpu.matmul %91, %80, %cst_27 {dimension_numbers = #tpu.dot_dimension_numbers<[2], [1], [1], [2], [0, 0, 0, 1, 1, 2], [0], [0]>} : vector<4x8x8xf32>, vector<4x8x8xf32>, vector<4x8x8xf32> -> vector<4x8x8xf32>
    "tpu.trace_stop"() : () -> ()
    %93 = vector.shape_cast %92 : vector<4x8x8xf32> to vector<32x8xf32>
    %94 = vector.extract_strided_slice %7 {offsets = [24, 0], sizes = [8, 32], strides = [1, 1]} : vector<32x32xf32> to vector<8x32xf32>
    %cst_28 = arith.constant dense<0.000000e+00> : vector<32x32xf32>
    %95 = tpu.matmul %93, %94, %cst_28 {dimension_numbers = #tpu.dot_dimension_numbers<[1], [0], [0], [1], [0, 0, 1, 1], [], []>} : vector<32x8xf32>, vector<8x32xf32>, vector<32x32xf32> -> vector<32x32xf32>
    %96 = arith.addf %74, %95 : vector<32x32xf32>
    %c0_29 = arith.constant 0 : index
    %c0_30 = arith.constant 0 : index
    %97 = vector.load %arg5[%c0_29, %c0_30] : memref<1x32xf32, #tpu.memory_space<vmem>>, vector<1x32xf32>
    %98 = vector.broadcast %97 : vector<1x32xf32> to vector<32x32xf32>
    %99 = arith.addf %96, %98 : vector<32x32xf32>
    %100 = vector.shape_cast %99 : vector<32x32xf32> to vector<4x8x32xf32>
    %c0_31 = arith.constant 0 : index
    %c0_32 = arith.constant 0 : index
    %c0_33 = arith.constant 0 : index
    %101 = vector.load %arg6[%c0_31, %c0_32, %c0_33] : memref<4x8x32xf32, #tpu.memory_space<vmem>>, vector<4x8x32xf32>
    tpu.vector_store %arg6[%c0_31, %c0_32, %c0_33], %100 {strides = array<i32>} : memref<4x8x32xf32, #tpu.memory_space<vmem>>, vector<4x8x32xf32>,
    return
  }
  func.func @transform_0(%arg0: i32) -> (i32, i32, i32) {
    %c0_i32 = arith.constant 0 : i32
    %c0_i32_0 = arith.constant 0 : i32
    %c0_i32_1 = arith.constant 0 : i32
    return %arg0, %c0_i32, %c0_i32_0 : i32, i32, i32
  }
  func.func @transform_1(%arg0: i32) -> (i32, i32) {
    %c0_i32 = arith.constant 0 : i32
    %c0_i32_0 = arith.constant 0 : i32
    %c0_i32_1 = arith.constant 0 : i32
    return %c0_i32, %c0_i32_0 : i32, i32
  }
  func.func @transform_2(%arg0: i32) -> (i32, i32) {
    %c0_i32 = arith.constant 0 : i32
    %c0_i32_0 = arith.constant 0 : i32
    %c0_i32_1 = arith.constant 0 : i32
    return %c0_i32, %c0_i32_0 : i32, i32
  }
  func.func @transform_3(%arg0: i32) -> (i32, i32) {
    %c0_i32 = arith.constant 0 : i32
    %c0_i32_0 = arith.constant 0 : i32
    %c0_i32_1 = arith.constant 0 : i32
    return %c0_i32, %c0_i32_0 : i32, i32
  }
  func.func @transform_4(%arg0: i32) -> (i32, i32) {
    %c0_i32 = arith.constant 0 : i32
    %c0_i32_0 = arith.constant 0 : i32
    %c0_i32_1 = arith.constant 0 : i32
    return %c0_i32, %c0_i32_0 : i32, i32
  }
  func.func @transform_5(%arg0: i32) -> (i32, i32, i32) {
    %c0_i32 = arith.constant 0 : i32
    %c0_i32_0 = arith.constant 0 : i32
    %c0_i32_1 = arith.constant 0 : i32
    return %arg0, %c0_i32, %c0_i32_0 : i32, i32, i32
  }
}

</mosaic_0001>

<bundles_post_ra>
// kernel: tpu_custom_call.1
= control target key start
LH: loop header
LB: loop body
LE: loop exit
PB: predicated region body
PF: predicated region fallthrough
CT: control target
= control target key end

     0   :  { %10 = vsyncpa [#allocation3], 0  ;;  %s2535_s0 = inlined_call_operand.hbm [shape: f32[8,8,32], index: 0, kind: input, shape index: {}]   ;;  %s2536_s1 = inlined_call_operand.hbm [shape: f32[32,96], index: 1, kind: input, shape index: {}]   ;;  %s2537_s2 = inlined_call_operand.vmem [shape: f32[1,96], index: 2, kind: input, shape index: {}]   ;;  %s2538_s3 = inlined_call_operand.hbm [shape: f32[32,32], index: 3, kind: input, shape index: {}]   ;;  %s2539_s4 = inlined_call_operand.vmem [shape: f32[1,32], index: 4, kind: input, shape index: {}]   ;;  %s2540_s5 = inlined_call_operand.hbm [shape: f32[8,8,32], index: 5, kind: output, shape index: {}]  }
   0x1   :  { %12 = vsyncpa [#allocation3 + $0x1], 0 }
   0x2   :  { %13 = vsyncpa [#allocation6], 0 }
   0x3   :  { %14 = vsyncpa [#allocation4], 0 }
   0x4   :  { %16 = vsyncpa [#allocation4 + $0x1], 0  ;;  %s2133_s18 = smov 0   ;;  %s2135_s19 = smov 0  }
   0x5   :  { %s2137_s20 = smov 0   ;;  %s2139_s21 = smov 0  }
   0x6 LB: > { %s2154_s22 = sadd.s32 4294967295, %s2084_s21   ;;  %s1667_s23 = sadd.s32 4294967294, %s2084_s21   ;;  %s2084_s21 = sphi %s2139_s21, %s2552_s21   ;;  %s2080_s20 = sphi %s2137_s20, %s2551_s20   ;;  %s2076_s19 = sphi %s2135_s19, %s2550_s19   ;;  %s2072_s18 = sphi %s2133_s18, %s2549_s18  }
   0x7   : > { %p42_p0 = scmp.ne.s32.totalorder %s2076_s19, %s2072_s18  ;;  %p43_p1 = scmp.eq.s32.totalorder %s2154_s22, 0 }
   0x8   : > { %p150_p2 = scmp.eq.s32.totalorder %s2154_s22, 1  ;;  %p156_p3 = scmp.eq.s32.totalorder %s1667_s23, 1 }
   0x9   : > { %p2163_p4 = por %p43_p1, %p42_p0  ;;  %p1668_p5 = scmp.ge.s32.totalorder %s2084_s21, 1 }
   0xa   : > { %p2168_p6 = por %p156_p3, %p42_p0  ;;  %p163_p7 = scmp.lt.s32.totalorder %s2084_s21, 3 }
   0xb   : > { %s174_s28 = sshll.u32 %s2536_s1, 4  ;;  %s2086_s30 = smov [#allocation5]   ;;  %s175_s28 = int_to_ptr.hbm [resolvable:$true] %s174_s28 }
   0xc   : > { %p2176_p8 = pnand %p1668_p5, %p163_p7  ;;  %s176_s6 = sshll.u32 %s2086_s30, 4  ;;  %s177_s6 = int_to_ptr.vmem [resolvable:$true] %s176_s6 }
   0xd   : > { %s191_s9 = sshll.u32 %s2538_s3, 4  ;;  %s2541_s10 = smov 128   ;;  %s192_s9 = int_to_ptr.hbm [resolvable:$true] %s191_s9 }
   0xe   : > { %p1768_p9 = pneg %p2176_p8  ;;  %s2088_s11 = smov 8  }
   0xf   : > { %s2089_s12 = smov [#allocation7]   ;;  %s2195_s14 = sadd.s32 1, %s2084_s21  }
  0x10   : > { %p1769_p10 = pnand %p1768_p9, %p43_p1  ;;  %s193_s13 = sshll.u32 %s2089_s12, 4  ;;  %s194_s13 = int_to_ptr.vmem [resolvable:$true] %s193_s13 }
  0x11   : > { %s29_s15 = sadd.s32 1, %s2080_s20  ;;  %s26_s16 = ssub.s32 %s2084_s21, %s2195_s14 }
  0x12   : > { %1771 = dma.hbm_to_vmem [thread:$0]  (!%p1769_p10), %s175_s28, 512, %s177_s6, [#allocation6], %s2541_s10, %s2541_s10, %s2088_s11  }
  0x13   : > { %1774 = dma.hbm_to_vmem [thread:$0]  (!%p1769_p10), %s192_s9, 512, %s194_s13, [#allocation6], %s2541_s10, %s2541_s10, %s2088_s11  }
  0x14   : > { %p36_p12 = scmp.ne.s32.totalorder %s2080_s20, %s2076_s19  ;;  %p27_p13 = scmp.eq.s32.totalorder %s26_s16, 0 }
  0x15   : > { %p37_p0 = scmp.eq.s32.totalorder %s2084_s21, 0  ;;  %p1785_p5 = scmp.lt.s32.totalorder %s2084_s21, 2 }
  0x16   : > { %p2205_p3 = por %p150_p2, %p36_p12  ;;  %s210_s26 = sand.u32 1, %s2080_s20  }
  0x17   : > { %s2211_s23 = scalar_select %p27_p13, %s2080_s20, %s29_s15  }
  0x18   : > { %p38_p7 = por %p37_p0, %p36_p12  ;;  %s1672_s27 = sshll.u32 %s210_s26, 5 }
  0x19   : > { %s1753_s28 = sshll.u32 %s2084_s21, 5  ;;  %s214_s8 = scalar_lea.vmem [#allocation2], %s1672_s27 }
  0x1a   : > { %s219_s7 = scalar_lea.hbm %s2535_s0, %s1753_s28  ;;  %s222_s9 = sshll.u32 %s214_s8, 4  ;;  %s223_s9 = int_to_ptr.vmem [resolvable:$true] %s222_s9 }
  0x1b   : > { %s220_s12 = sshll.u32 %s219_s7, 4  ;;  %p2218_p2 = pnand %p1785_p5, %p38_p7  ;;  %s221_s12 = int_to_ptr.hbm [resolvable:$true] %s220_s12 }
  0x1c   : > { %s211_s15 = scalar_lea.sflag [#allocation3], %s210_s26  ;;  %s1984_s16 = sshra.s32 %s221_s12, 4  ;;  %s1985_s16 = int_to_ptr.hbm [resolvable:$true] %s1984_s16 }
  0x1d   : > { %s1986_s10 = scalar_lea.hbm %s1985_s16, 32  ;;  %p1988_p10 = pneg %p2218_p2 }
  0x1e   : > { %p1987_p9 = scmp.ne.s32.totalorder %s1985_s16, %s1986_s10  ;;  %s1991_s30 = scalar_lea.hbm %s2535_s0, 64 }
  0x1f   : > { %p1992_p0 = scmp.lt.s32.totalorder %s1985_s16, %s2535_s0  ;;  %p1993_p5 = scmp.lt.s32.totalorder %s1991_s30, %s1986_s10 }
  0x20   : > { %p1989_p12 = pnand %p1988_p10, %p1987_p9 }
  0x21   : > { %p1994_p7 = por %p1993_p5, %p1992_p0 }
  0x22   : > { %p1990_p13 = pneg %p1989_p12 }
  0x24   : > { %p1995_p11 = pnand %p1994_p7, %p1990_p13 }
  0x26   : > { %1998 = shalt.err (!%p1995_p11)
}
  0x27   : > { %s2547_s26 = smov 128   ;;  %234 = sbr.rel (%p2176_p8) target bundleno = 2301 (0x8fd), region = 40 }
  0x28   : > { %1778 = dma.hbm_to_vmem [thread:$0]  (!%p2218_p2), %s221_s12, 512, %s223_s9, %s211_s15, %s2547_s26, %s2547_s26, %s2088_s11  }
  0x29   : > { %s2238_s8 = sand.u32 (!%p2176_p8), 1, %s2076_s19  }
  0x2a   : > { %s1676_s10 = sshll.u32 (!%p2176_p8), %s2238_s8, 5  ;;  %s237_s16 = scalar_lea.sflag (!%p2176_p8), [#allocation3], %s2238_s8 }
  0x2b   : > { %s240_s28 = scalar_lea.vmem (!%p2176_p8), [#allocation2], %s1676_s10 }
  0x2c   : > { %2059 = dma.done.wait (%p2163_p4), %s237_s16, 512  }
  0x2d   : > { %2061 = vsyncadd (%p2163_p4), %s237_s16, 4294966784 }
  0x2e   : > { %2063 = dma.done.wait (%p43_p1), [#allocation6], 1024  }
  0x2f   : > { %2065 = vsyncadd (%p43_p1), [#allocation6], 4294966272  ;;  %v287_v0 = vld [vmem:[#allocation5 + $0x18] sm:$0xff]  ;;  %v286_v1 = vld [vmem:[#allocation5 + $0x10] sm:$0xff]  ;;  %vm292_vm0 = vcmask 261120   ;;  %s2090_s11 = smov 96  }
  0x30   : > { %317 = vmatpush.msra.mxu0 %v287_v0  ;;  %v285_v2 = vld [vmem:[#allocation5 + $0x8] sm:$0xff]  ;;  %v284_v3 = vld [vmem:[#allocation5] sm:$0xff]  ;;  %v282_v6 = vld [vmem:[%s240_s28 + $0x10] sm:$0xff]  ;;  %vm341_vm1 = vcmask 64512   ;;  %s2091_s9 = smov 64   ;;  %s2092_s12 = smov 88  }
  0x31   : > { %v280_v4 = vld [vmem:[%s240_s28] sm:$0xff]  ;;  %v281_v5 = vld [vmem:[%s240_s28 + $0x8] sm:$0xff]  ;;  %v283_v7 = vld [vmem:[%s240_s28 + $0x18] sm:$0xff]  ;;  %s2093_s13 = smov 120   ;;  %s2094_s15 = smov 56  }
  0x32   : > { %318 = vmatpush.msra.mxu0 %v286_v1  ;;  %v1858_v9 = vld [vmem:[%s2537_s2] ss:$0 sm:$0xff]  ;;  %s2095_s27 = smov 80   ;;  %s2096_s30 = smov 112  }
  0x33   : > { %s2097_s6 = smov 72   ;;  %s2098_s7 = smov 104  }
  0x34   : > { %319 = vmatpush.msra.mxu0 %v285_v2  ;;  %s2099_s26 = smov 48   ;;  %s2100_s16 = smov 40  }
  0x35   : > { %s277_s29 = scalar_lea.vmem [#allocation8], %s1676_s10  ;;  %s1754_s10 = sshll.u32 %s2154_s22, 5 }
  0x36   : > { %320 = vmatpush.msra.mxu0 %v284_v3 }
  0x37   : > { %1680 = vmatmul.msk.f32.vlgmr.msra.gmra.mxu0 %vm292_vm0, %v280_v4 }
  0x3f   : > { %1681 = vmatmul.msk.f32.gmra.mxu0 %vm292_vm0, %v281_v5 }
  0x47   : > { %1682 = vmatmul.msk.f32.gmra.mxu0 %vm292_vm0, %v282_v6 }
  0x4f   : > { %1683 = vmatmul.msk.f32.gmra.mxu0 %vm292_vm0, %v283_v7 }
  0xb4   : > { %v322_v8 = vpop.f32.mrf.mxu0 }
  0xb5   : > { %v2262_v13 = vadd.f32 %v1858_v9, %v322_v8 }
  0xbc   : > { %v325_v10 = vpop.f32.mrf.mxu0 }
  0xbd   : > { %v2259_v11 = vadd.f32 %v1858_v9, %v325_v10 }
  0xbf   : > { %367 = vrot.lane.b32.xlu0 %v2259_v11, %s2090_s11  ;;  %v1838_v25 = vpack.i.bf16 %v2262_v13, %v2259_v11 }
  0xc4   : > { %v328_v12 = vpop.f32.mrf.mxu0 }
  0xc5   : > { %v2265_v15 = vadd.f32 %v1858_v9, %v328_v12 }
  0xc7   : > { %339 = vrot.lane.b32.xlu0 %v2262_v13, %s2090_s11 }
  0xcc   : > { %v331_v14 = vpop.f32.mrf.mxu0 }
  0xcd   : > { %v2267_v16 = vadd.f32 %v1858_v9, %v331_v14 }
  0xcf   : > { %421 = vrot.lane.b32.xlu1 %v2267_v16, %s2090_s11  ;;  %394 = vrot.lane.b32.xlu0 %v2265_v15, %s2090_s11  ;;  %v1843_v5 = vpack.i.bf16 %v2265_v15, %v2267_v16 }
 0x131   : > { %v368_v17 = vpop.permute.xlu0 %367 }
 0x132   : > { %1686 = vmatpush.xpose.msk.msra.mxu3 %vm341_vm1, %v368_v17 }
 0x135   : > { %1687 = vmatmul.msk.f32.vlgmr.msra.gmra.mxu3 %vm341_vm1, %v2259_v11 }
 0x139   : > { %v340_v18 = vpop.permute.xlu0 %339 }
 0x13a   : > { %1684 = vmatpush.xpose.msk.msra.mxu1 %vm341_vm1, %v340_v18 }
 0x13d   : > { %1685 = vmatmul.msk.f32.vlgmr.msra.gmra.mxu1 %vm341_vm1, %v2262_v13 }
 0x141   : > { %v422_v19 = vpop.permute.xlu1 %421  ;;  %v395_v20 = vpop.permute.xlu0 %394 }
 0x142   : > { %1688 = vmatpush.xpose.msk.msrb.mxu3 %vm341_vm1, %v395_v20  ;;  %1690 = vmatpush.xpose.msk.msrb.mxu1 %vm341_vm1, %v422_v19 }
 0x145   : > { %1689 = vmatmul.msk.f32.vlgmr.msrb.gmra.mxu3 %vm341_vm1, %v2265_v15  ;;  %1691 = vmatmul.msk.f32.vlgmr.msrb.gmra.mxu1 %vm341_vm1, %v2267_v16 }
 0x1b8   : > { %v390_v21 = vpop.f32.mrf.mxu3 }
 0x1b9   : > { %v450_v22 = vsel %vm341_vm1, %v390_v21, -inf }
 0x1ba   : > { %451 = vmax.xlane.f32.xlu1 %v450_v22  ;;  %v363_v23 = vpop.f32.mrf.mxu1 }
 0x1bb   : > { %v447_v24 = vsel %vm341_vm1, %v363_v23, -inf }
 0x1bc   : > { %448 = vmax.xlane.f32.xlu2 %v447_v24 }
 0x1c2   : > { %v444_v26 = vpop.f32.mrf.mxu1 }
 0x1c3   : > { %v456_v27 = vsel %vm341_vm1, %v444_v26, -inf }
 0x1c8   : > { %v417_v55 = vpop.f32.mrf.mxu3 }
 0x1c9   : > { %v453_v56 = vsel %vm341_vm1, %v417_v55, -inf }
 0x1d4   : > { %1839 = vrot.lane.b32.xlu2 %v1838_v25, %s2091_s9 }
 0x1dc   : > { %597 = vrot.lane.b32.xlu2 %v2262_v13, %s2092_s12 }
 0x205   : > { %457 = vmax.xlane.f32.xlu2 %v456_v27 }
 0x21d   : > { %595 = vrot.lane.b32.xlu2 %v2262_v13, %s2093_s13 }
 0x22d   : > { %v452_v30 = vpop.xlane.xlu1 %451 }
 0x22e   : > { %v460_v32 = vsub.f32 %v390_v21, %v452_v30 }
 0x22f   : > { %v449_v28 = vpop.xlane.xlu2 %448 }
 0x230   : > { %v459_v29 = vsub.f32 %v363_v23, %v449_v28  ;;  %v465_v34 = vmul.f32 1.442695, %v460_v32 }
 0x232   : > { %v463_v31 = vmul.f32 1.442695, %v459_v29 }
 0x234   : > { %1860 = vpow2.f32 %v463_v31 }
 0x235   : > { %1862 = vpow2.f32 %v465_v34 }
 0x237   : > { %v1840_v33 = vpop.permute.xlu2 %1839 }
 0x238   : > { %v1841_v35 = vunpack.i.l.bf16 %v1840_v33  ;;  %v1842_v36 = vunpack.i.h.bf16 %v1840_v33 }
 0x23a   : > { %v1861_v37 = vpop.eup %1860  ;;  %512 = vmatpush.msra.mxu2 %v1842_v36  ;;  %538 = vmatpush.msra.mxu3 %v1841_v35 }
 0x23b   : > { %v471_v38 = vsel %vm341_vm1, %v1861_v37, 0.0  ;;  %v1863_v40 = vpop.eup %1862 }
 0x23c   : > { %472 = vadd.xlane.f32.xlu0 %v471_v38  ;;  %v474_v41 = vsel %vm341_vm1, %v1863_v40, 0.0 }
 0x23f   : > { %v598_v39 = vpop.permute.xlu2 %597 }
 0x240   : > { %1696 = vmatpush.xpose.msk.msrb.mxu3 %vm341_vm1, %v598_v39 }
 0x246   : > { %475 = vadd.xlane.f32.xlu2 %v474_v41 }
 0x250   : > { %679 = vrot.lane.b32.xlu0 %v2267_v16, %s2093_s13 }
 0x25e   : > { %569 = vrot.lane.b32.xlu2 %v2267_v16, %s2091_s9 }
 0x266   : > { %653 = vrot.lane.b32.xlu2 %v2265_v15, %s2092_s12 }
 0x26e   : > { %651 = vrot.lane.b32.xlu2 %v2265_v15, %s2093_s13 }
 0x278   : > { %v458_v42 = vpop.xlane.xlu2 %457 }
 0x279   : > { %v462_v43 = vsub.f32 %v444_v26, %v458_v42 }
 0x27b   : > { %v469_v44 = vmul.f32 1.442695, %v462_v43 }
 0x27d   : > { %1864 = vpow2.f32 %v469_v44 }
 0x280   : > { %v596_v48 = vpop.permute.xlu2 %595 }
 0x283   : > { %v1865_v45 = vpop.eup %1864 }
 0x284   : > { %v480_v46 = vsel %vm341_vm1, %v1865_v45, 0.0 }
 0x285   : > { %481 = vadd.xlane.f32.xlu1 %v480_v46 }
 0x29e   : > { %681 = vrot.lane.b32.xlu1 %v2267_v16, %s2092_s12 }
 0x2af   : > { %v473_v47 = vpop.xlane.xlu0 %472 }
 0x2b0   : > { %1866 = vrcp.f32 %v473_v47 }
 0x2b6   : > { %v1867_v49 = vpop.eup %1866 }
 0x2b7   : > { %v487_v50 = vmul.f32 %v1867_v49, %v1861_v37 }
 0x2b9   : > { %v476_v51 = vpop.xlane.xlu2 %475  ;;  %1692 = vmatmul.msk.f32.vlgmr.msra.gmra.mxu2 %vm341_vm1, %v487_v50 }
 0x2ba   : > { %1868 = vrcp.f32 %v476_v51 }
 0x2c0   : > { %v1869_v52 = vpop.eup %1868 }
 0x2c1   : > { %v488_v53 = vmul.f32 %v1869_v52, %v1863_v40  ;;  %v570_v54 = vpop.permute.xlu2 %569 }
 0x2c2   : > { %590 = vmatpush.msrb.mxu2 %v570_v54  ;;  %v680_v63 = vpop.permute.xlu0 %679 }
 0x2c3   : > { %1693 = vmatmul.msk.f32.vlgmr.msra.gmra.mxu3 %vm341_vm1, %v488_v53 }
 0x2c8   : > { %454 = vmax.xlane.f32.xlu1 %v453_v56 }
 0x2c9   : > { %v654_v57 = vpop.permute.xlu2 %653 }
 0x2ca   : > { %1700 = vmatpush.xpose.msk.msra.mxu2 %vm341_vm1, %v654_v57 }
 0x2cb   : > { %1697 = vmatmul.msk.f32.vlgmr.msrb.gmra.mxu3 %vm341_vm1, %v596_v48 }
 0x2d1   : > { %v652_v61 = vpop.permute.xlu2 %651 }
 0x2f8   : > { %v482_v58 = vpop.xlane.xlu1 %481 }
 0x2f9   : > { %1870 = vrcp.f32 %v482_v58 }
 0x2ff   : > { %v1871_v59 = vpop.eup %1870 }
 0x300   : > { %v490_v60 = vmul.f32 %v1871_v59, %v1865_v45 }
 0x302   : > { %1695 = vmatmul.msk.f32.vlgmr.msrb.gmra.mxu2 %vm341_vm1, %v490_v60 }
 0x30a   : > { %1701 = vmatmul.msk.f32.vlgmr.msra.gmra.mxu2 %vm341_vm1, %v652_v61 }
 0x310   : > { %v682_v62 = vpop.permute.xlu1 %681 }
 0x311   : > { %1702 = vmatpush.xpose.msk.msra.mxu3 %vm341_vm1, %v682_v62 }
 0x314   : > { %1703 = vmatmul.msk.f32.vlgmr.msra.gmra.mxu3 %vm341_vm1, %v680_v63 }
 0x33b   : > { %v455_v0 = vpop.xlane.xlu1 %454 }
 0x33c   : > { %v461_v1 = vsub.f32 %v417_v55, %v455_v0  ;;  %v2326_v6 = vpop.f32.mrf.mxu2 }
 0x33e   : > { %v467_v2 = vmul.f32 1.442695, %v461_v1 }
 0x340   : > { %1872 = vpow2.f32 %v467_v2 }
 0x346   : > { %v1873_v3 = vpop.eup %1872  ;;  %v2330_v7 = vpop.f32.mrf.mxu3 }
 0x347   : > { %v477_v4 = vsel %vm341_vm1, %v1873_v3, 0.0 }
 0x348   : > { %478 = vadd.xlane.f32.xlu1 %v477_v4  ;;  %v1848_v4 = vpack.i.bf16 %v2267_v16, %v2259_v11 }
 0x34e   : > { %v2337_v12 = vpop.f32.mrf.mxu3 }
 0x361   : > { %623 = vrot.lane.b32.xlu1 %v2259_v11, %s2093_s13  ;;  %s1572_s13 = sshll.u32 %s277_s29, 4  ;;  %s1573_s13 = int_to_ptr.vmem [resolvable:$true] %s1572_s13 }
 0x369   : > { %1844 = vrot.lane.b32.xlu1 %v1843_v5, %s2094_s15 }
 0x371   : > { %967 = vrot.lane.b32.xlu1 %v2259_v11, %s2095_s27 }
 0x379   : > { %965 = vrot.lane.b32.xlu1 %v2259_v11, %s2096_s30 }
 0x381   : > { %939 = vrot.lane.b32.xlu1 %v2262_v13, %s2095_s27 }
 0x385   : > { %v2332_v8 = vpop.f32.mrf.mxu2 }
 0x389   : > { %937 = vrot.lane.b32.xlu1 %v2262_v13, %s2096_s30 }
 0x38d   : > { %v676_v9 = vpop.f32.mrf.mxu2 }
 0x38e   : > { %v713_v10 = vsel %vm341_vm1, %v676_v9, -inf }
 0x38f   : > { %714 = vmax.xlane.f32.xlu2 %v713_v10  ;;  %v334_v10 = vld [vmem:[#allocation7] sm:$0xff] }
 0x391   : > { %995 = vrot.lane.b32.xlu1 %v2265_v15, %s2095_s27 }
 0x397   : > { %v704_v14 = vpop.f32.mrf.mxu3 }
 0x398   : > { %v716_v17 = vsel %vm341_vm1, %v704_v14, -inf }
 0x399   : > { %993 = vrot.lane.b32.xlu1 %v2265_v15, %s2096_s30  ;;  %717 = vmax.xlane.f32.xlu0 %v716_v17 }
 0x3a7   : > { %625 = vrot.lane.b32.xlu2 %v2259_v11, %s2092_s12  ;;  %s1571_s12 = scalar_lea.hbm %s2540_s5, %s1754_s10 }
 0x3ad   : > { %543 = vrot.lane.b32.xlu0 %v2265_v15, %s2091_s9 }
 0x3bb   : > { %v479_v18 = vpop.xlane.xlu1 %478 }
 0x3d3   : > { %v624_v19 = vpop.permute.xlu1 %623 }
 0x3db   : > { %v1845_v20 = vpop.permute.xlu1 %1844 }
 0x3dc   : > { %v1847_v21 = vunpack.i.h.bf16 %v1845_v20  ;;  %v1846_v22 = vunpack.i.l.bf16 %v1845_v20 }
 0x3de   : > { %824 = vmatpush.msrb.mxu3 %v1847_v21  ;;  %850 = vmatpush.msrb.mxu0 %v1846_v22 }
 0x3e3   : > { %v968_v23 = vpop.permute.xlu1 %967 }
 0x3e4   : > { %1718 = vmatpush.xpose.msk.msra.mxu0 %vm341_vm1, %v968_v23 }
 0x3eb   : > { %v966_v24 = vpop.permute.xlu1 %965 }
 0x3f3   : > { %v940_v25 = vpop.permute.xlu1 %939 }
 0x3f4   : > { %1716 = vmatpush.xpose.msk.msra.mxu3 %vm341_vm1, %v940_v25 }
 0x3fb   : > { %v938_v40 = vpop.permute.xlu1 %937 }
 0x402   : > { %v715_v26 = vpop.xlane.xlu2 %714 }
 0x403   : > { %v721_v27 = vsub.f32 %v676_v9, %v715_v26  ;;  %v996_v44 = vpop.permute.xlu1 %995 }
 0x405   : > { %v727_v28 = vmul.f32 1.442695, %v721_v27 }
 0x407   : > { %1874 = vpow2.f32 %v727_v28 }
 0x40a   : > { %v626_v39 = vpop.permute.xlu2 %625 }
 0x40b   : > { %v994_v48 = vpop.permute.xlu1 %993 }
 0x40c   : > { %v718_v29 = vpop.xlane.xlu0 %717 }
 0x40d   : > { %v1875_v30 = vpop.eup %1874  ;;  %v722_v31 = vsub.f32 %v704_v14, %v718_v29 }
 0x40e   : > { %v737_v32 = vsel %vm341_vm1, %v1875_v30, 0.0 }
 0x40f   : > { %v729_v33 = vmul.f32 1.442695, %v722_v31  ;;  %738 = vadd.xlane.f32.xlu2 %v737_v32 }
 0x411   : > { %1876 = vpow2.f32 %v729_v33 }
 0x412   : > { %1878 = vrcp.f32 %v479_v18 }
 0x417   : > { %v1877_v34 = vpop.eup %1876 }
 0x418   : > { %v740_v35 = vsel %vm341_vm1, %v1877_v34, 0.0  ;;  %v1879_v36 = vpop.eup %1878 }
 0x419   : > { %741 = vadd.xlane.f32.xlu0 %v740_v35  ;;  %v489_v37 = vmul.f32 %v1879_v36, %v1873_v3 }
 0x41f   : > { %v544_v38 = vpop.permute.xlu0 %543 }
 0x420   : > { %564 = vmatpush.msra.mxu1 %v544_v38 }
 0x421   : > { %1694 = vmatmul.msk.f32.vlgmr.msra.gmra.mxu1 %vm341_vm1, %v489_v37 }
 0x422   : > { %1698 = vmatpush.xpose.msk.msrb.mxu1 %vm341_vm1, %v626_v39 }
 0x427   : > { %1021 = vrot.lane.b32.xlu2 %v2267_v16, %s2096_s30 }
 0x429   : > { %1699 = vmatmul.msk.f32.vlgmr.msrb.gmra.mxu1 %vm341_vm1, %v624_v19 }
 0x42d   : > { %1023 = vrot.lane.b32.xlu0 %v2267_v16, %s2095_s27  ;;  %s1560_s27 = scalar_lea.sflag [#allocation4], %s2238_s8 }
 0x482   : > { %v739_v41 = vpop.xlane.xlu2 %738 }
 0x483   : > { %1880 = vrcp.f32 %v739_v41  ;;  %v707_v41 = vsel %vm341_vm1, %v2337_v12, -inf }
 0x489   : > { %v1881_v42 = vpop.eup %1880 }
 0x48a   : > { %v749_v43 = vmul.f32 %v1881_v42, %v1875_v30  ;;  %v1022_v51 = vpop.permute.xlu2 %1021 }
 0x48c   : > { %1706 = vmatmul.msk.f32.vlgmr.msrb.gmra.mxu3 %vm341_vm1, %v749_v43  ;;  %v742_v45 = vpop.xlane.xlu0 %741 }
 0x48d   : > { %1720 = vmatpush.xpose.msk.msrb.mxu3 %vm341_vm1, %v996_v44  ;;  %1882 = vrcp.f32 %v742_v45 }
 0x493   : > { %v1883_v46 = vpop.eup %1882 }
 0x494   : > { %1717 = vmatmul.msk.f32.vlgmr.msra.gmra.mxu3 %vm341_vm1, %v938_v40  ;;  %v750_v47 = vmul.f32 %v1883_v46, %v1877_v34 }
 0x496   : > { %1707 = vmatmul.msk.f32.vlgmr.msrb.gmra.mxu0 %vm341_vm1, %v750_v47 }
 0x49c   : > { %1721 = vmatmul.msk.f32.vlgmr.msrb.gmra.mxu3 %vm341_vm1, %v994_v48 }
 0x49e   : > { %v2364_v49 = vpop.f32.mrf.mxu1  ;;  %1719 = vmatmul.msk.f32.vlgmr.msra.gmra.mxu0 %vm341_vm1, %v966_v24 }
 0x49f   : > { %v1024_v50 = vpop.permute.xlu0 %1023 }
 0x4a0   : > { %1722 = vmatpush.xpose.msk.msrb.mxu0 %vm341_vm1, %v1024_v50 }
 0x4a6   : > { %v648_v52 = vpop.f32.mrf.mxu1  ;;  %1723 = vmatmul.msk.f32.vlgmr.msrb.gmra.mxu0 %vm341_vm1, %v1022_v51 }
 0x4a7   : > { %v710_v53 = vsel %vm341_vm1, %v648_v52, -inf }
 0x4a8   : > { %711 = vmax.xlane.f32.xlu0 %v710_v53 }
 0x4bc   : > { %777 = vrot.lane.b32.xlu0 %v2259_v11, %s2094_s15 }
 0x50f   : > { %v2372_v54 = vpop.f32.mrf.mxu3 }
 0x513   : > { %v2374_v55 = vpop.f32.mrf.mxu0 }
 0x517   : > { %v962_v56 = vpop.f32.mrf.mxu3 }
 0x518   : > { %v1049_v57 = vsel %vm341_vm1, %v962_v56, -inf }
 0x519   : > { %1050 = vmax.xlane.f32.xlu0 %v1049_v57 }
 0x51b   : > { %v990_v58 = vpop.f32.mrf.mxu0  ;;  %v712_v59 = vpop.xlane.xlu0 %711 }
 0x51c   : > { %v720_v60 = vsub.f32 %v648_v52, %v712_v59  ;;  %v1052_v3 = vsel %vm341_vm1, %v990_v58, -inf }
 0x51e   : > { %v725_v61 = vmul.f32 1.442695, %v720_v60 }
 0x51f   : > { %v1018_v5 = vpop.f32.mrf.mxu3 }
 0x520   : > { %1884 = vpow2.f32 %v725_v61  ;;  %v1055_v9 = vsel %vm341_vm1, %v1018_v5, -inf }
 0x523   : > { %v1046_v62 = vpop.f32.mrf.mxu0 }
 0x524   : > { %v1058_v63 = vsel %vm341_vm1, %v1046_v62, -inf }
 0x525   : > { %1059 = vmax.xlane.f32.xlu2 %v1058_v63 }
 0x526   : > { %v1885_v0 = vpop.eup %1884 }
 0x527   : > { %v734_v1 = vsel %vm341_vm1, %v1885_v0, 0.0 }
 0x528   : > { %735 = vadd.xlane.f32.xlu1 %v734_v1 }
 0x52d   : > { %1244 = vrot.lane.b32.xlu0 %v2262_v13, %s2097_s6 }
 0x52e   : > { %v778_v2 = vpop.permute.xlu0 %777 }
 0x52f   : > { %798 = vmatpush.msrb.mxu2 %v778_v2 }
 0x530   : > { %1053 = vmax.xlane.f32.xlu1 %v1052_v3 }
 0x531   : > { %923 = vmatpush.msra.mxu2 %v334_v10 }
 0x53d   : > { %1242 = vrot.lane.b32.xlu2 %v2262_v13, %s2098_s7 }
 0x549   : > { %1849 = vrot.lane.b32.xlu1 %v1848_v4, %s2099_s26 }
 0x566   : > { %1056 = vmax.xlane.f32.xlu2 %v1055_v9 }
 0x58c   : > { %v1051_v14 = vpop.xlane.xlu0 %1050 }
 0x58d   : > { %v1061_v19 = vsub.f32 %v962_v56, %v1051_v14 }
 0x58f   : > { %v1065_v22 = vmul.f32 1.442695, %v1061_v19 }
 0x598   : > { %v1060_v17 = vpop.xlane.xlu2 %1059 }
 0x599   : > { %v1064_v18 = vsub.f32 %v1046_v62, %v1060_v17 }
 0x59b   : > { %v1071_v20 = vmul.f32 1.442695, %v1064_v18  ;;  %v736_v21 = vpop.xlane.xlu1 %735 }
 0x59c   : > { %1886 = vrcp.f32 %v736_v21 }
 0x59d   : > { %1888 = vpow2.f32 %v1071_v20 }
 0x59e   : > { %1890 = vpow2.f32 %v1065_v22 }
 0x59f   : > { %v1245_v29 = vpop.permute.xlu0 %1244 }
 0x5a2   : > { %v1887_v23 = vpop.eup %1886 }
 0x5a3   : > { %v1889_v24 = vpop.eup %1888  ;;  %v748_v25 = vmul.f32 %v1887_v23, %v1885_v0  ;;  %v1054_v26 = vpop.xlane.xlu1 %1053 }
 0x5a4   : > { %v1062_v27 = vsub.f32 %v990_v58, %v1054_v26  ;;  %v1082_v28 = vsel %vm341_vm1, %v1889_v24, 0.0  ;;  %v1891_v31 = vpop.eup %1890 }
 0x5a5   : > { %1083 = vadd.xlane.f32.xlu2 %v1082_v28  ;;  %1705 = vmatmul.msk.f32.vlgmr.msrb.gmra.mxu2 %vm341_vm1, %v748_v25  ;;  %v1073_v32 = vsel %vm341_vm1, %v1891_v31, 0.0 }
 0x5a6   : > { %v1067_v30 = vmul.f32 1.442695, %v1062_v27  ;;  %1732 = vmatpush.xpose.msk.msrb.mxu2 %vm341_vm1, %v1245_v29 }
 0x5a8   : > { %1892 = vpow2.f32 %v1067_v30 }
 0x5ad   : > { %1712 = vmatmul.msk.f32.vlgmr.msra.gmra.mxu2 %vm341_vm1, %v2326_v6  ;;  %1074 = vadd.xlane.f32.xlu2 %v1073_v32  ;;  %v1243_v6 = vpop.permute.xlu2 %1242 }
 0x5ae   : > { %v1893_v33 = vpop.eup %1892 }
 0x5af   : > { %v1076_v34 = vsel %vm341_vm1, %v1893_v33, 0.0 }
 0x5b0   : > { %1077 = vadd.xlane.f32.xlu1 %v1076_v34  ;;  %v1853_v34 = vpack.i.bf16 %v2265_v15, %v2262_v13 }
 0x5b5   : > { %1713 = vmatmul.msk.f32.gmra.mxu2 %vm341_vm1, %v2330_v7 }
 0x5bb   : > { %v1850_v35 = vpop.permute.xlu1 %1849 }
 0x5bc   : > { %v1852_v36 = vunpack.i.h.bf16 %v1850_v35  ;;  %v1851_v37 = vunpack.i.l.bf16 %v1850_v35 }
 0x5bd   : > { %1714 = vmatmul.msk.f32.gmra.mxu2 %vm341_vm1, %v2364_v49 }
 0x5be   : > { %1140 = vmatpush.msra.mxu0 %v1851_v37 }
 0x5c0   : > { %1192 = vmatpush.msrb.mxu0 %v1852_v36 }
 0x5c5   : > { %1715 = vmatmul.msk.f32.gmra.mxu2 %vm341_vm1, %v2332_v8  ;;  %1328 = vrot.lane.b32.xlu2 %v2267_v16, %s2097_s6 }
 0x5c9   : > { %1093 = vrot.lane.b32.xlu1 %v2262_v13, %s2099_s26 }
 0x5cd   : > { %1326 = vrot.lane.b32.xlu2 %v2267_v16, %s2098_s7  ;;  %1733 = vmatmul.msk.f32.vlgmr.msrb.gmra.mxu2 %vm341_vm1, %v1243_v6 }
 0x5d1   : > { %1300 = vrot.lane.b32.xlu1 %v2265_v15, %s2097_s6 }
 0x5d5   : > { %1272 = vrot.lane.b32.xlu2 %v2259_v11, %s2097_s6 }
 0x5d9   : > { %v1057_v7 = vpop.xlane.xlu2 %1056  ;;  %1298 = vrot.lane.b32.xlu1 %v2265_v15, %s2098_s7 }
 0x5da   : > { %v1063_v8 = vsub.f32 %v1018_v5, %v1057_v7 }
 0x5dc   : > { %v1069_v38 = vmul.f32 1.442695, %v1063_v8 }
 0x5de   : > { %1894 = vpow2.f32 %v1069_v38 }
 0x5e1   : > { %1145 = vrot.lane.b32.xlu1 %v2265_v15, %s2099_s26  ;;  %s2034_s26 = scalar_lea.hbm %s2540_s5, 64 }
 0x5e4   : > { %v1895_v39 = vpop.eup %1894 }
 0x5e5   : > { %v1079_v40 = vsel %vm341_vm1, %v1895_v39, 0.0 }
 0x5e6   : > { %1080 = vadd.xlane.f32.xlu0 %v1079_v40 }
 0x5e9   : > { %1270 = vrot.lane.b32.xlu1 %v2259_v11, %s2098_s7 }
 0x5ee   : > { %708 = vmax.xlane.f32.xlu0 %v707_v41 }
 0x618   : > { %v1084_v42 = vpop.xlane.xlu2 %1083 }
 0x620   : > { %v1075_v43 = vpop.xlane.xlu2 %1074 }
 0x623   : > { %v1078_v44 = vpop.xlane.xlu1 %1077 }
 0x624   : > { %1896 = vrcp.f32 %v1078_v44 }
 0x625   : > { %1898 = vrcp.f32 %v1084_v42 }
 0x626   : > { %1900 = vrcp.f32 %v1075_v43 }
 0x628   : > { %v2421_v45 = vpop.f32.mrf.mxu2  ;;  %v1329_v46 = vpop.permute.xlu2 %1328 }
 0x629   : > { %1738 = vmatpush.xpose.msk.msra.mxu2 %vm341_vm1, %v1329_v46 }
 0x62a   : > { %v1897_v47 = vpop.eup %1896 }
 0x62b   : > { %v1090_v48 = vmul.f32 %v1897_v47, %v1893_v33  ;;  %v1899_v49 = vpop.eup %1898 }
 0x62c   : > { %v1092_v52 = vmul.f32 %v1899_v49, %v1889_v24  ;;  %v1901_v53 = vpop.eup %1900 }
 0x62d   : > { %1725 = vmatmul.msk.f32.vlgmr.msra.gmra.mxu0 %vm341_vm1, %v1090_v48  ;;  %v1089_v57 = vmul.f32 %v1901_v53, %v1891_v31 }
 0x630   : > { %v2425_v50 = vpop.f32.mrf.mxu2  ;;  %v1327_v51 = vpop.permute.xlu2 %1326 }
 0x631   : > { %1739 = vmatmul.msk.f32.vlgmr.msra.gmra.mxu2 %vm341_vm1, %v1327_v51 }
 0x635   : > { %1727 = vmatmul.msk.f32.vlgmr.msrb.gmra.mxu0 %vm341_vm1, %v1092_v52 }
 0x638   : > { %v2429_v56 = vpop.f32.mrf.mxu2  ;;  %v1273_v2 = vpop.permute.xlu2 %1272 }
 0x63b   : > { %v1094_v58 = vpop.permute.xlu1 %1093 }
 0x63c   : > { %1114 = vmatpush.msra.mxu3 %v1094_v58 }
 0x63d   : > { %1724 = vmatmul.msk.f32.vlgmr.msra.gmra.mxu3 %vm341_vm1, %v1089_v57 }
 0x640   : > { %v2432_v59 = vpop.f32.mrf.mxu2 }
 0x643   : > { %v1301_v60 = vpop.permute.xlu1 %1300 }
 0x644   : > { %1736 = vmatpush.xpose.msk.msra.mxu0 %vm341_vm1, %v1301_v60  ;;  %v335_v60 = vld [vmem:[#allocation7 + $0x8] sm:$0xff] }
 0x648   : > { %v2435_v61 = vpop.f32.mrf.mxu2 }
 0x64b   : > { %v1299_v62 = vpop.permute.xlu1 %1298 }
 0x64c   : > { %1737 = vmatmul.msk.f32.vlgmr.msra.gmra.mxu0 %vm341_vm1, %v1299_v62  ;;  %v336_v62 = vld [vmem:[#allocation7 + $0x10] sm:$0xff] }
 0x650   : > { %v1267_v63 = vpop.f32.mrf.mxu2 }
 0x651   : > { %v1354_v0 = vsel %vm341_vm1, %v1267_v63, -inf }
 0x652   : > { %1355 = vmax.xlane.f32.xlu2 %v1354_v0 }
 0x653   : > { %v1146_v1 = vpop.permute.xlu1 %1145 }
 0x654   : > { %1166 = vmatpush.msrb.mxu3 %v1146_v1 }
 0x656   : > { %1734 = vmatpush.xpose.msk.msra.mxu3 %vm341_vm1, %v1273_v2 }
 0x659   : > { %v1081_v3 = vpop.xlane.xlu0 %1080 }
 0x65a   : > { %1902 = vrcp.f32 %v1081_v3 }
 0x65b   : > { %v1271_v9 = vpop.permute.xlu1 %1270 }
 0x660   : > { %v1903_v4 = vpop.eup %1902 }
 0x661   : > { %v1091_v5 = vmul.f32 %v1903_v4, %v1895_v39  ;;  %v709_v10 = vpop.xlane.xlu0 %708 }
 0x662   : > { %v719_v14 = vsub.f32 %v2337_v12, %v709_v10  ;;  %v337_v10 = vld [vmem:[#allocation7 + $0x18] sm:$0xff] }
 0x663   : > { %1726 = vmatmul.msk.f32.vlgmr.msrb.gmra.mxu3 %vm341_vm1, %v1091_v5 }
 0x664   : > { %v723_v17 = vmul.f32 1.442695, %v719_v14 }
 0x666   : > { %1904 = vpow2.f32 %v723_v17 }
 0x66b   : > { %1735 = vmatmul.msk.f32.vlgmr.msra.gmra.mxu3 %vm341_vm1, %v1271_v9 }
 0x66c   : > { %v1905_v21 = vpop.eup %1904 }
 0x66d   : > { %v731_v22 = vsel %vm341_vm1, %v1905_v21, 0.0 }
 0x6aa   : > { %v2444_v20 = vpop.f32.mrf.mxu0 }
 0x6b2   : > { %v2447_v23 = vpop.f32.mrf.mxu0 }
 0x6b4   : > { %v1351_v18 = vpop.f32.mrf.mxu2 }
 0x6b5   : > { %v1363_v19 = vsel %vm341_vm1, %v1351_v18, -inf }
 0x6b6   : > { %1364 = vmax.xlane.f32.xlu0 %v1363_v19 }
 0x6be   : > { %732 = vadd.xlane.f32.xlu0 %v731_v22 }
 0x6c0   : > { %v2453_v30 = vpop.f32.mrf.mxu3 }
 0x6c5   : > { %v1356_v24 = vpop.xlane.xlu2 %1355 }
 0x6c6   : > { %v1366_v25 = vsub.f32 %v1267_v63, %v1356_v24 }
 0x6c8   : > { %v1370_v26 = vmul.f32 1.442695, %v1366_v25 }
 0x6c9   : > { %v1323_v27 = vpop.f32.mrf.mxu0 }
 0x6ca   : > { %1906 = vpow2.f32 %v1370_v26  ;;  %v1360_v12 = vsel %vm341_vm1, %v1323_v27, -inf }
 0x6cb   : > { %1361 = vmax.xlane.f32.xlu1 %v1360_v12 }
 0x6d0   : > { %v1907_v28 = vpop.eup %1906 }
 0x6d1   : > { %v1378_v29 = vsel %vm341_vm1, %v1907_v28, 0.0 }
 0x6d2   : > { %1379 = vadd.xlane.f32.xlu2 %v1378_v29  ;;  %751 = vrot.lane.b32.xlu0 %v2262_v13, %s2094_s15  ;;  %s1574_s15 = sshll.u32 %s1571_s12, 4  ;;  %s1575_s15 = int_to_ptr.hbm [resolvable:$true] %s1574_s15 }
 0x6d3   : > { %s2028_s30 = sshra.s32 %s1575_s15, 4  ;;  %s2029_s30 = int_to_ptr.hbm [resolvable:$true] %s2028_s30 }
 0x6d4   : > { %s2030_s22 = scalar_lea.hbm %s2029_s30, 32  ;;  %p2035_p11 = scmp.lt.s32.totalorder %s2029_s30, %s2540_s5 }
 0x6d5   : > { %p2031_p1 = scmp.ne.s32.totalorder %s2029_s30, %s2030_s22  ;;  %p2036_p2 = scmp.lt.s32.totalorder %s2034_s26, %s2030_s22 }
 0x6d7   : > { %p2032_p4 = pnand %p2031_p1, %p2205_p3  ;;  %p2037_p9 = por %p2036_p2, %p2035_p11 }
 0x6d9   : > { %p2033_p8 = pneg %p2032_p4 }
 0x6db   : > { %p2038_p10 = pnand %p2037_p9, %p2033_p8 }
 0x6e6   : > { %v2455_v31 = vpop.f32.mrf.mxu3 }
 0x6ee   : > { %v1295_v32 = vpop.f32.mrf.mxu3 }
 0x6ef   : > { %v1357_v33 = vsel %vm341_vm1, %v1295_v32, -inf }
 0x6fc   : > { %1358 = vmax.xlane.f32.xlu0 %v1357_v33 }
 0x710   : > { %1854 = vrot.lane.b32.xlu0 %v1853_v34, %s2100_s16 }
 0x718   : > { %1424 = vrot.lane.b32.xlu0 %v2259_v11, %s2100_s16 }
 0x729   : > { %v1365_v35 = vpop.xlane.xlu0 %1364 }
 0x72a   : > { %v1369_v36 = vsub.f32 %v1351_v18, %v1365_v35 }
 0x72c   : > { %v1376_v37 = vmul.f32 1.442695, %v1369_v36 }
 0x72e   : > { %1908 = vpow2.f32 %v1376_v37 }
 0x731   : > { %v733_v8 = vpop.xlane.xlu0 %732 }
 0x732   : > { %1910 = vrcp.f32 %v733_v8 }
 0x734   : > { %v1909_v6 = vpop.eup %1908 }
 0x735   : > { %v1387_v7 = vsel %vm341_vm1, %v1909_v6, 0.0 }
 0x736   : > { %1388 = vadd.xlane.f32.xlu2 %v1387_v7 }
 0x738   : > { %v1911_v40 = vpop.eup %1910 }
 0x739   : > { %v747_v13 = vmul.f32 %v1911_v40, %v1905_v21 }
 0x73e   : > { %v1362_v38 = vpop.xlane.xlu1 %1361 }
 0x73f   : > { %v1368_v39 = vsub.f32 %v1323_v27, %v1362_v38  ;;  %v1859_v27 = vld [vmem:[%s2539_s4] ss:$0 sm:$0xff] }
 0x741   : > { %v1374_v41 = vmul.f32 1.442695, %v1368_v39 }
 0x743   : > { %1912 = vpow2.f32 %v1374_v41 }
 0x744   : > { %v752_v15 = vpop.permute.xlu0 %751 }
 0x745   : > { %772 = vmatpush.msra.mxu1 %v752_v15  ;;  %v1380_v47 = vpop.xlane.xlu2 %1379 }
 0x746   : > { %1704 = vmatmul.msk.f32.vlgmr.msra.gmra.mxu1 %vm341_vm1, %v747_v13 }
 0x747   : > { %882 = vmatpush.msrb.mxu1 %v335_v60 }
 0x749   : > { %v1913_v11 = vpop.eup %1912  ;;  %1224 = vmatpush.msra.mxu1 %v336_v62 }
 0x74a   : > { %v1384_v42 = vsel %vm341_vm1, %v1913_v11, 0.0 }
 0x74b   : > { %1385 = vadd.xlane.f32.xlu1 %v1384_v42 }
 0x764   : > { %1476 = vrot.lane.b32.xlu1 %v2267_v16, %s2100_s16 }
 0x76f   : > { %v1359_v43 = vpop.xlane.xlu0 %1358 }
 0x770   : > { %v1367_v44 = vsub.f32 %v1295_v32, %v1359_v43 }
 0x772   : > { %v1372_v46 = vmul.f32 1.442695, %v1367_v44 }
 0x774   : > { %1914 = vpow2.f32 %v1372_v46 }
 0x775   : > { %1916 = vrcp.f32 %v1380_v47 }
 0x77a   : > { %v1915_v48 = vpop.eup %1914 }
 0x77b   : > { %v1381_v49 = vsel %vm341_vm1, %v1915_v48, 0.0  ;;  %v1917_v51 = vpop.eup %1916 }
 0x77c   : > { %1382 = vadd.xlane.f32.xlu2 %v1381_v49  ;;  %v1394_v58 = vmul.f32 %v1917_v51, %v1907_v28 }
 0x782   : > { %v1855_v52 = vpop.permute.xlu0 %1854 }
 0x783   : > { %v1857_v53 = vunpack.i.h.bf16 %v1855_v52  ;;  %v1856_v57 = vunpack.i.l.bf16 %v1855_v52 }
 0x785   : > { %1419 = vmatpush.msrb.mxu3 %v1856_v57  ;;  %1471 = vmatpush.msrb.mxu2 %v1857_v53 }
 0x786   : > { %1740 = vmatmul.msk.f32.vlgmr.msrb.gmra.mxu3 %vm341_vm1, %v1394_v58 }
 0x787   : > { %1755 = vmatpush.msra.mxu2 %v337_v10 }
 0x78a   : > { %v1425_v16 = vpop.permute.xlu0 %1424 }
 0x78b   : > { %1445 = vmatpush.msrb.mxu0 %v1425_v16 }
 0x78d   : > { %1529 = vmatpush.msra.mxu0 %v337_v10 }
 0x7a9   : > { %v1389_v3 = vpop.xlane.xlu2 %1388 }
 0x7be   : > { %v1386_v63 = vpop.xlane.xlu1 %1385 }
 0x7bf   : > { %1918 = vrcp.f32 %v1386_v63 }
 0x7c0   : > { %1920 = vrcp.f32 %v1389_v3 }
 0x7c3   : > { %v774_v0 = vpop.f32.mrf.mxu1 }
 0x7c4   : > { %1708 = vmatmul.msk.f32.vlgmr.msrb.gmra.mxu1 %vm341_vm1, %v774_v0 }
 0x7c5   : > { %v1919_v1 = vpop.eup %1918 }
 0x7c6   : > { %v1396_v2 = vmul.f32 %v1919_v1, %v1913_v11  ;;  %v1921_v4 = vpop.eup %1920 }
 0x7c7   : > { %v1397_v5 = vmul.f32 %v1921_v4, %v1909_v6 }
 0x7c8   : > { %1742 = vmatmul.msk.f32.vlgmr.msrb.gmra.mxu2 %vm341_vm1, %v1396_v2 }
 0x7cc   : > { %1709 = vmatmul.msk.f32.gmra.mxu1 %vm341_vm1, %v2421_v45 }
 0x7d4   : > { %1710 = vmatmul.msk.f32.gmra.mxu1 %vm341_vm1, %v2372_v54 }
 0x7d6   : > { %v1477_v9 = vpop.permute.xlu1 %1476 }
 0x7d7   : > { %1497 = vmatpush.msra.mxu3 %v1477_v9 }
 0x7d8   : > { %1743 = vmatmul.msk.f32.vlgmr.msra.gmra.mxu3 %vm341_vm1, %v1397_v5 }
 0x7dc   : > { %1711 = vmatmul.msk.f32.gmra.mxu1 %vm341_vm1, %v2374_v55 }
 0x7e4   : > { %1728 = vmatmul.msk.f32.vlgmr.msra.gmra.mxu1 %vm341_vm1, %v2453_v30 }
 0x7ec   : > { %1729 = vmatmul.msk.f32.gmra.mxu1 %vm341_vm1, %v2444_v20 }
 0x7ef   : > { %v1383_v45 = vpop.xlane.xlu2 %1382 }
 0x7f0   : > { %1922 = vrcp.f32 %v1383_v45 }
 0x7f4   : > { %1730 = vmatmul.msk.f32.gmra.mxu1 %vm341_vm1, %v2455_v31 }
 0x7f6   : > { %v1923_v54 = vpop.eup %1922 }
 0x7f7   : > { %v1395_v14 = vmul.f32 %v1923_v54, %v1915_v48 }
 0x7f9   : > { %1741 = vmatmul.msk.f32.vlgmr.msrb.gmra.mxu0 %vm341_vm1, %v1395_v14 }
 0x7fc   : > { %1731 = vmatmul.msk.f32.gmra.mxu1 %vm341_vm1, %v2447_v23 }
 0x809   : > { %v1421_v55 = vpop.f32.mrf.mxu3 }
 0x80a   : > { %1744 = vmatmul.msk.f32.vlgmr.msra.gmra.mxu0 %vm341_vm1, %v1421_v55 }
 0x841   : > { %v884_v18 = vpop.f32.mrf.mxu1 }
 0x842   : > { %v926_v23 = vadd.f32 %v2425_v50, %v884_v18 }
 0x849   : > { %v887_v20 = vpop.f32.mrf.mxu1 }
 0x84b   : > { %v1473_v17 = vpop.f32.mrf.mxu2 }
 0x84c   : > { %1746 = vmatmul.msk.f32.vlgmr.msra.gmra.mxu2 %vm341_vm1, %v1473_v17 }
 0x851   : > { %v890_v21 = vpop.f32.mrf.mxu1 }
 0x852   : > { %v932_v32 = vadd.f32 %v2432_v59, %v890_v21  ;;  %v929_v59 = vadd.f32 %v2429_v56, %v887_v20 }
 0x859   : > { %v893_v24 = vpop.f32.mrf.mxu1 }
 0x85a   : > { %v935_v37 = vadd.f32 %v2435_v61, %v893_v24 }
 0x85b   : > { %v1499_v19 = vpop.f32.mrf.mxu3 }
 0x85c   : > { %1747 = vmatmul.msk.f32.gmra.mxu2 %vm341_vm1, %v1499_v19 }
 0x861   : > { %v1226_v25 = vpop.f32.mrf.mxu1 }
 0x862   : > { %v1238_v26 = vadd.f32 %v1226_v25, %v926_v23 }
 0x869   : > { %v1229_v30 = vpop.f32.mrf.mxu1 }
 0x86a   : > { %v1239_v39 = vadd.f32 %v1229_v30, %v929_v59 }
 0x871   : > { %v1232_v31 = vpop.f32.mrf.mxu1 }
 0x872   : > { %v1240_v33 = vadd.f32 %v1232_v31, %v932_v32 }
 0x876   : > { %v1447_v22 = vpop.f32.mrf.mxu0 }
 0x877   : > { %1745 = vmatmul.msk.f32.gmra.mxu0 %vm341_vm1, %v1447_v22 }
 0x879   : > { %v1235_v36 = vpop.f32.mrf.mxu1 }
 0x87a   : > { %v1241_v6 = vadd.f32 %v1235_v36, %v935_v37 }
 0x887   : > { %v1531_v12 = vpop.f32.mrf.mxu0 }
 0x888   : > { %v1543_v28 = vadd.f32 %v1531_v12, %v1238_v26 }
 0x88a   : > { %v1551_v29 = vadd.f32 %v1859_v27, %v1543_v28 }
 0x88c   : > { %1555 = vst.msk [vmem:[%s277_s29] sm:$0xff] %vm292_vm0, %v1551_v29 }
 0x8cf   : > { %v1537_v34 = vpop.f32.mrf.mxu2 }
 0x8d0   : > { %v1545_v50 = vadd.f32 %v1537_v34, %v1240_v33 }
 0x8d2   : > { %v1553_v35 = vadd.f32 %v1859_v27, %v1545_v50 }
 0x8d4   : > { %1557 = vst.msk [vmem:[%s277_s29 + $0x10] sm:$0xff] %vm292_vm0, %v1553_v35 }
 0x8df   : > { %v1540_v7 = vpop.f32.mrf.mxu2 }
 0x8e0   : > { %v1546_v8 = vadd.f32 %v1540_v7, %v1241_v6 }
 0x8e2   : > { %v1554_v38 = vadd.f32 %v1859_v27, %v1546_v8 }
 0x8e4   : > { %1558 = vst.msk [vmem:[%s277_s29 + $0x18] sm:$0xff] %vm292_vm0, %v1554_v38 }
 0x8f4   : > { %v1534_v40 = vpop.f32.mrf.mxu0 }
 0x8f5   : > { %v1544_v61 = vadd.f32 %v1534_v40, %v1239_v39 }
 0x8f7   : > { %v1552_v41 = vadd.f32 %v1859_v27, %v1544_v61 }
 0x8f9   : > { %1556 = vst.msk [vmem:[%s277_s29 + $0x8] sm:$0xff] %vm292_vm0, %v1552_v41 }
 0x8fa   : > { %2041 = shalt.err (!%p2038_p10)
}
 0x8fb   : > { %s2101_s8 = smov 128   ;;  %s2102_s24 = smov 8  }
 0x8fc   : > { %1766 = dma.vmem_to_hbm [thread:$0]  (%p2205_p3), %s1573_s13, 512, %s1575_s15, %s1560_s27, %s2101_s8, %s2101_s8, %s2102_s24  }
 0x8fd PF: > { %s1589_s29 = sand.u32 1, %s2072_s18   ;;  %p2548_p12 = scmp.ge.s32.totalorder %s2084_s21, 2 }
 0x8fe   : > { %s1590_s10 = scalar_lea.sflag [#allocation4], %s1589_s29 }
 0x8ff   : > { %p1780_p13 = pnand %p2548_p12, %p2168_p6 }
 0x901   : > { %p1781_p0 = pneg %p1780_p13 }
 0x903   : > { %2067 = dma.done.wait (%p1781_p0), %s1590_s10, 512  }
 0x904   : > { %2069 = vsyncadd (%p1781_p0), %s1590_s10, 4294966784  ;;  %p19_p5 = scmp.ge.s32.totalorder %s2195_s14, 4   ;;  %s2549_s18 = smov %s2076_s19 }
 0x905   : > { %s2550_s19 = smov %s2080_s20  ;;  %s2551_s20 = smov %s2211_s23 }
 0x906   : > { %s2552_s21 = smov %s2195_s14  ;;  %21 = sbr.rel (!%p19_p5) target bundleno = 6 (0x6), region = 93 }
 0x90b   :  { %1596 = vsyncpa [#allocation3], 1 }
 0x90c   :  { %1598 = vsyncpa [#allocation3 + $0x1], 1 }
 0x90d   :  { %1599 = vsyncpa [#allocation6], 1 }
 0x90e   :  { %1600 = vsyncpa [#allocation4], 1 }
 0x90f   :  { %1602 = vsyncpa [#allocation4 + $0x1], 1 }

</bundles_post_ra>
